<compile_context>
chip_gen: v7x
topology: tpu7x:2x2x1
jax: 0.10.0
libtpu: 0.0.40
codegen_flags: <defaults>
</compile_context>

<pallas_src>
import functools

import jax
import jax.numpy as jnp
from jax.experimental import pallas as pl
from jax.experimental.pallas import tpu as pltpu

_LANES = 128
_SUBLANES = 8
_MIB = 1024 * 1024


def _round_up(x, m):
    return (x + m - 1) // m * m


def _cdiv(a, b):
    return -(-a // b)


def _vmem_budget_params():
    """Generation-aware (working_set_budget, vmem_limit_bytes) with conservative fallback."""
    kind = ""
    try:
        kind = jax.devices()[0].device_kind.lower()
    except Exception:
        pass
    vmem_cap = 0
    try:
        vmem_cap = int(getattr(pltpu.get_tpu_info(), "vmem_capacity_bytes", 0) or 0)
    except Exception:
        pass
    if any(s in kind for s in ("v2", "v3")) or (0 < vmem_cap <= 32 * _MIB):
        return 6 * _MIB, 14 * _MIB            # very small-VMEM parts
    if any(s in kind for s in ("v5", "v6")) or vmem_cap >= 128 * _MIB:
        return 40 * _MIB, 64 * _MIB           # v5e/v5p/v6e: 128 MiB VMEM, single TC
    return 24 * _MIB, 40 * _MIB               # v7x (64 MiB per TC), v4, or unknown


def _focal_loss_kernel(logits_ref, targets_ref, out_ref, *, alpha, gamma, rem, needs_mask):
    x = logits_ref[...].astype(jnp.float32)   # (T, C); f32 compute (v5e VPU/EUP have no bf16)
    t = targets_ref[...]                      # (T, 1) int32
    num_classes = x.shape[1]

    # Numerically stable softmax pieces (one EUP exp per logit).
    m = jnp.max(x, axis=1, keepdims=True)                     # (T, 1)
    e = jnp.exp(x - m)                                        # (T, C)
    sum_e = jnp.sum(e, axis=1, keepdims=True)                 # (T, 1)

    # Target selection: one (1, C) class-iota row broadcast against the (T, 1) target column —
    # no tile-sized iota is materialized.
    cls = jax.lax.broadcasted_iota(jnp.int32, (1, num_classes), 1)
    is_tgt = cls == t                                         # (T, C) via broadcast
    tgt_logit = jnp.sum(jnp.where(is_tgt, x, 0.0), axis=1, keepdims=True)   # x[target]
    tgt_e = jnp.sum(jnp.where(is_tgt, e, 0.0), axis=1, keepdims=True)       # exp(x[target]-m)

    # nll = logsumexp(x) - x[target];  pt = softmax(x)[target] = exp(-nll), built from
    # exp(x - m) already on hand (no second per-row EUP exp).  Approx reciprocal runs on the
    # EUP slot; one Newton step (two cheap VPU ops on (T, 1)) restores ~f32 accuracy.
    nll = jnp.log(sum_e) + m - tgt_logit                      # (T, 1)
    inv = pl.reciprocal(sum_e, approx=True)
    inv = inv * (2.0 - sum_e * inv)
    pt = tgt_e * inv

    one_minus_pt = jnp.maximum(1.0 - pt, 0.0)                 # guard tiny negative rounding
    g = float(gamma)
    if g == 2.0:
        mod = one_minus_pt * one_minus_pt                     # avoid pow -> exp(g*log(x)) on EUP
    elif g == 1.0:
        mod = one_minus_pt
    elif g == 0.0:
        mod = jnp.ones_like(one_minus_pt)
    else:
        mod = one_minus_pt ** g
    focal = alpha * mod * nll                                 # (T, 1)

    lane = jax.lax.broadcasted_iota(jnp.int32, out_ref.shape, 1)

    def _write(total):
        # Lane-dense (1, 128) partial: tile sum in lane 0, zeros elsewhere; the wrapper reduces
        # the whole output row with a plain jnp.sum (no strided [:, 0] gather).
        out_ref[...] = jnp.where(lane == 0, total, 0.0).astype(out_ref.dtype)

    if needs_mask:
        last = pl.num_programs(0) - 1

        @pl.when(pl.program_id(0) == last)
        def _():
            # Rows >= rem of the final tile read unspecified padding; jnp.where (vsel) does not
            # propagate NaN/Inf from the unselected branch, so mask with a select, never with a
            # multiply-by-mask.
            row = jax.lax.broadcasted_iota(jnp.int32, focal.shape, 0)
            _write(jnp.sum(jnp.where(row < rem, focal, 0.0)))

        @pl.when(pl.program_id(0) != last)
        def _():
            _write(jnp.sum(focal))
    else:
        _write(jnp.sum(focal))


def focal_loss(logits, targets, *, alpha=0.25, gamma=2.0, reduction="mean",
               max_tile_rows=None):
    """Pallas TPU FocalLoss.  logits: (N, C) float, targets: (N,) int  ->  scalar f32."""
    if reduction not in ("mean", "sum"):
        # TODO(synk): reduction='none' (per-sample vector output) not implemented.
        raise NotImplementedError(f"reduction={reduction!r} not supported")

    n, c = logits.shape
    targets2 = targets.astype(jnp.int32).reshape(n, 1)

    itemsize = logits.dtype.itemsize
    gran = max(_SUBLANES, 32 // itemsize)     # 8 (f32), 16 (bf16), 32 (i8/fp8) sublane packing
    padded_c = _round_up(c, _LANES)           # lane-padded class extent of the VMEM block

    working_set_budget, vmem_limit = _vmem_budget_params()

    # VMEM bytes per batch row: 2 pipeline buffers of the input block (real dtype itemsize)
    # plus ~4 f32-sized live temporaries (upcast x, exp(x-m), select temps).
    # TODO(synk): no class-dimension tiling; assumes a (gran, C) slab fits VMEM (true for
    # classifier-sized C).
    per_row_bytes = padded_c * (2 * itemsize + 4 * 4)
    tile = max(gran, working_set_budget // per_row_bytes // gran * gran)
    if max_tile_rows is not None:
        tile = max(gran, min(tile, max_tile_rows) // gran * gran)
    if tile >= n:
        if n >= 2 * gran:
            # Split into >= 2 tiles so the "parallel" grid axis can shard across v7x's two
            # TensorCores; negligible cost on single-TC v5e/v6e.
            tile = _round_up(_cdiv(n, 2), gran)
        else:
            tile = n                          # single full-extent block (always legal)
    num_tiles = _cdiv(n, tile)
    rem = n - (num_tiles - 1) * tile          # valid rows of the final tile
    needs_mask = rem != tile

    kernel = functools.partial(
        _focal_loss_kernel, alpha=float(alpha), gamma=float(gamma),
        rem=rem, needs_mask=needs_mask)

    cost = pl.CostEstimate(
        flops=10 * n * c + 16 * n,
        transcendentals=n * c + 3 * n,
        bytes_accessed=n * c * itemsize + 4 * n + 4 * num_tiles * _LANES)

    partials = pl.pallas_call(
        kernel,
        grid=(num_tiles,),
        in_specs=[pl.BlockSpec((tile, c), lambda i: (i, 0)),    # logits: read HBM exactly once
                  pl.BlockSpec((tile, 1), lambda i: (i, 0))],   # targets
        out_specs=pl.BlockSpec((1, _LANES), lambda i: (0, i)),  # lane-dense partial row
        out_shape=jax.ShapeDtypeStruct((1, num_tiles * _LANES), jnp.float32),
        compiler_params=pltpu.CompilerParams(
            dimension_semantics=("parallel",),
            vmem_limit_bytes=vmem_limit),
        cost_estimate=cost,
    )(logits, targets2)

    total = jnp.sum(partials)
    return total / n if reduction == "mean" else total


def _reference_focal_loss(logits, targets, *, alpha=0.25, gamma=2.0, reduction="mean"):
    logp = jax.nn.log_softmax(logits.astype(jnp.float32), axis=-1)
    nll = -jnp.take_along_axis(logp, targets[:, None].astype(jnp.int32), axis=-1)[:, 0]
    pt = jnp.exp(-nll)
    foc = alpha * (1.0 - pt) ** gamma * nll
    return foc.mean() if reduction == "mean" else foc.sum()


if __name__ == "__main__":
    key = jax.random.PRNGKey(0)
    k1, k2, k3, k4, k5, k6, k7, k8 = jax.random.split(key, 8)

    # Case 1: module-typical small shape (batch=8, classes=32) -> single full-extent tile.
    N1, C1 = 8, 32
    logits1 = jax.random.normal(k1, (N1, C1), jnp.float32) * 2.0
    targets1 = jax.random.randint(k2, (N1,), 0, C1, dtype=jnp.int32)
    out1 = jax.block_until_ready(focal_loss(logits1, targets1))
    ref1 = _reference_focal_loss(logits1, targets1)
    assert jnp.allclose(out1, ref1, rtol=1e-4, atol=1e-4), (out1, ref1)

    # Case 2: N > tile -> multi-tile grid + masked partial last tile, sum reduction.
    N2, C2 = 200, 32
    logits2 = jax.random.normal(k3, (N2, C2), jnp.float32) * 2.0
    targets2 = jax.random.randint(k4, (N2,), 0, C2, dtype=jnp.int32)
    out2 = jax.block_until_ready(
        focal_loss(logits2, targets2, max_tile_rows=128, reduction="sum"))
    ref2 = _reference_focal_loss(logits2, targets2, reduction="sum")
    assert jnp.allclose(out2, ref2, rtol=1e-4, atol=1e-4), (out2, ref2)

    # Case 3: C >= 128 (lane-dense classes), several tiles with a partial last tile.
    N3, C3 = 60, 128
    logits3 = jax.random.normal(k5, (N3, C3), jnp.float32) * 2.0
    targets3 = jax.random.randint(k6, (N3,), 0, C3, dtype=jnp.int32)
    out3 = jax.block_until_ready(focal_loss(logits3, targets3, max_tile_rows=16))
    ref3 = _reference_focal_loss(logits3, targets3)
    assert jnp.allclose(out3, ref3, rtol=1e-4, atol=1e-4), (out3, ref3)

    # Case 4: bf16 logits -> 16-row sublane granularity, automatic >=2-tile split, f32 compute.
    N4, C4 = 100, 32
    logits4 = (jax.random.normal(k7, (N4, C4), jnp.float32) * 2.0).astype(jnp.bfloat16)
    targets4 = jax.random.randint(k8, (N4,), 0, C4, dtype=jnp.int32)
    out4 = jax.block_until_ready(focal_loss(logits4, targets4))
    ref4 = _reference_focal_loss(logits4, targets4)
    assert jnp.allclose(out4, ref4, rtol=1e-3, atol=1e-3), (out4, ref4)

    print("KERNEL_OK")
</pallas_src>

<mosaic_0001>
module attributes {stable_mosaic.version = 11 : i64} {
  func.func @_focal_loss_kernel(%arg0: i32, %arg1: memref<8x32xf32, #tpu.memory_space<vmem>>, %arg2: memref<8x1xi32, #tpu.memory_space<vmem>>, %arg3: memref<1x128xf32, #tpu.memory_space<vmem>>) attributes {dimension_semantics = [#tpu.dimension_semantics<parallel>], iteration_bounds = array<i64: 1>, scalar_prefetch = 0 : i64, scratch_operands = 0 : i64, tpu.core_type = #tpu.core_type<tc>, window_params = [{transform_indices = @transform_0, window_bounds = array<i64: 8, 32>}, {transform_indices = @transform_1, window_bounds = array<i64: 8, 1>}, {transform_indices = @transform_2, window_bounds = array<i64: 1, 128>}]} {
    %c0 = arith.constant 0 : index
    %c0_0 = arith.constant 0 : index
    %0 = vector.load %arg1[%c0, %c0_0] : memref<8x32xf32, #tpu.memory_space<vmem>>, vector<8x32xf32>
    %c0_1 = arith.constant 0 : index
    %c0_2 = arith.constant 0 : index
    %1 = vector.load %arg2[%c0_1, %c0_2] : memref<8x1xi32, #tpu.memory_space<vmem>>, vector<8x1xi32>
    %cst = arith.constant dense<0xFF800000> : vector<8xf32>
    %2 = vector.multi_reduction <maximumf>, %0, %cst [1] : vector<8x32xf32> to vector<8xf32>
    %3 = vector.shape_cast %2 : vector<8xf32> to vector<8x1xf32>
    %4 = vector.broadcast %3 : vector<8x1xf32> to vector<8x32xf32>
    %5 = arith.subf %0, %4 : vector<8x32xf32>
    %6 = math.exp %5 : vector<8x32xf32>
    %cst_3 = arith.constant dense<0.000000e+00> : vector<8xf32>
    %7 = vector.multi_reduction <add>, %6, %cst_3 [1] : vector<8x32xf32> to vector<8xf32>
    %8 = vector.shape_cast %7 : vector<8xf32> to vector<8x1xf32>
    %9 = tpu.iota {dimensions = array<i32: 1>} : vector<1x32xi32>
    %10 = vector.broadcast %9 : vector<1x32xi32> to vector<8x32xi32>
    %11 = vector.broadcast %1 : vector<8x1xi32> to vector<8x32xi32>
    %12 = arith.cmpi eq, %10, %11 : vector<8x32xi32>
    %cst_4 = arith.constant 0.000000e+00 : f32
    %13 = vector.broadcast %cst_4 : f32 to vector<8x32xf32>
    %14 = arith.select %12, %0, %13 : vector<8x32xi1>, vector<8x32xf32>
    %cst_5 = arith.constant dense<0.000000e+00> : vector<8xf32>
    %15 = vector.multi_reduction <add>, %14, %cst_5 [1] : vector<8x32xf32> to vector<8xf32>
    %16 = vector.shape_cast %15 : vector<8xf32> to vector<8x1xf32>
    %cst_6 = arith.constant 0.000000e+00 : f32
    %17 = vector.broadcast %cst_6 : f32 to vector<8x32xf32>
    %18 = arith.select %12, %6, %17 : vector<8x32xi1>, vector<8x32xf32>
    %cst_7 = arith.constant dense<0.000000e+00> : vector<8xf32>
    %19 = vector.multi_reduction <add>, %18, %cst_7 [1] : vector<8x32xf32> to vector<8xf32>
    %20 = vector.shape_cast %19 : vector<8xf32> to vector<8x1xf32>
    %21 = math.log %8 : vector<8x1xf32>
    %22 = arith.addf %21, %3 : vector<8x1xf32>
    %23 = arith.subf %22, %16 : vector<8x1xf32>
    %24 = tpu.reciprocal %8 {approx = true} : vector<8x1xf32> -> vector<8x1xf32>
    %25 = arith.mulf %8, %24 : vector<8x1xf32>
    %cst_8 = arith.constant 2.000000e+00 : f32
    %26 = vector.broadcast %cst_8 : f32 to vector<8x1xf32>
    %27 = arith.subf %26, %25 : vector<8x1xf32>
    %28 = arith.mulf %24, %27 : vector<8x1xf32>
    %29 = arith.mulf %20, %28 : vector<8x1xf32>
    %cst_9 = arith.constant 1.000000e+00 : f32
    %30 = vector.broadcast %cst_9 : f32 to vector<8x1xf32>
    %31 = arith.subf %30, %29 : vector<8x1xf32>
    %cst_10 = arith.constant 0.000000e+00 : f32
    %32 = vector.broadcast %cst_10 : f32 to vector<8x1xf32>
    %33 = arith.maximumf %31, %32 : vector<8x1xf32>
    %34 = arith.mulf %33, %33 : vector<8x1xf32>
    %cst_11 = arith.constant 2.500000e-01 : f32
    %35 = vector.broadcast %cst_11 : f32 to vector<8x1xf32>
    %36 = arith.mulf %35, %34 : vector<8x1xf32>
    %37 = arith.mulf %36, %23 : vector<8x1xf32>
    %38 = tpu.iota {dimensions = array<i32: 1>} : vector<1x128xi32>
    %39 = vector.shape_cast %37 : vector<8x1xf32> to vector<1x8x1xf32>
    %cst_12 = arith.constant dense<0.000000e+00> : vector<1xf32>
    %40 = vector.multi_reduction <add>, %39, %cst_12 [1, 2] : vector<1x8x1xf32> to vector<1xf32>
    %41 = vector.shape_cast %40 : vector<1xf32> to vector<1x1x1xf32>
    %42 = vector.extract %41[0, 0, 0] : f32 from vector<1x1x1xf32>
    %c0_i32 = arith.constant 0 : i32
    %43 = vector.broadcast %c0_i32 : i32 to vector<1x128xi32>
    %44 = arith.cmpi eq, %38, %43 : vector<1x128xi32>
    %cst_13 = arith.constant 0.000000e+00 : f32
    %45 = vector.broadcast %42 : f32 to vector<1x128xf32>
    %46 = vector.broadcast %cst_13 : f32 to vector<1x128xf32>
    %47 = arith.select %44, %45, %46 : vector<1x128xi1>, vector<1x128xf32>
    %c0_14 = arith.constant 0 : index
    %c0_15 = arith.constant 0 : index
    %48 = vector.load %arg3[%c0_14, %c0_15] : memref<1x128xf32, #tpu.memory_space<vmem>>, vector<1x128xf32>
    tpu.vector_store %arg3[%c0_14, %c0_15], %47 {strides = array<i32>} : memref<1x128xf32, #tpu.memory_space<vmem>>, vector<1x128xf32>,
    return
  }
  func.func @transform_0(%arg0: i32) -> (i32, i32) {
    %c0_i32 = arith.constant 0 : i32
    %c0_i32_0 = arith.constant 0 : i32
    return %arg0, %c0_i32 : i32, i32
  }
  func.func @transform_1(%arg0: i32) -> (i32, i32) {
    %c0_i32 = arith.constant 0 : i32
    %c0_i32_0 = arith.constant 0 : i32
    return %arg0, %c0_i32 : i32, i32
  }
  func.func @transform_2(%arg0: i32) -> (i32, i32) {
    %c0_i32 = arith.constant 0 : i32
    %c0_i32_0 = arith.constant 0 : i32
    return %c0_i32, %arg0 : i32, i32
  }
}

</mosaic_0001>

<bundles_post_ra>
// kernel: tpu_custom_call.1
= control target key start
LH: loop header
LB: loop body
LE: loop exit
PB: predicated region body
PF: predicated region fallthrough
CT: control target
= control target key end

     0   :  { %vm14_vm0 = vcmask 261120   ;;  %s155_s0 = inlined_call_operand.vmem [shape: f32[8,32], index: 0, kind: input, shape index: {}]   ;;  %s156_s1 = inlined_call_operand.vmem [shape: s32[8,1], index: 1, kind: input, shape index: {}]   ;;  %s157_s2 = inlined_call_operand.hbm [shape: f32[1,128], index: 2, kind: output, shape index: {}]  }
   0x1   :  { %v12_v0 = vld [vmem:[%s155_s0] sm:$0xff] }
   0x2   :  { %7 = vsyncpa [#allocation3], 0  ;;  %v15_v1 = vsel %vm14_vm0, %v12_v0, -inf  ;;  %v116_v2 = vmov 0   ;;  %v13_v3 = vld [vmem:[%s156_s1] sm:$0xff]  ;;  %v24_v7 = vlaneseq  ;;  %vm52_vm2 = vcmask 7168  }
   0x3   :  { %85 = vset.pattern.permute.xlu0 %v116_v2  ;;  %s117_s0 = smov [#allocation2]  }
   0x4   :  { %16 = vmax.xlane.f32.xlu0 %v15_v1  ;;  %v25_v8 = vand.u32 127, %v24_v7  ;;  %s73_s1 = sshll.u32 %s117_s0, 4  ;;  %s74_s1 = int_to_ptr.vmem [resolvable:$true] %s73_s1 }
   0x5   :  { %s92_s14 = scalar_lea.vmem %s74_s1, 16  ;;  %s96_s15 = scalar_lea.vmem %s74_s1, 32 }
   0x6   :  { %vm63_vm3 = vcmp.eq.s32.totalorder %v25_v8, 0  ;;  %p93_p0 = scmp.ne.s32.totalorder %s74_s1, %s92_s14  ;;  %p97_p1 = scmp.lt.s32.totalorder %s74_s1, %s74_s1 }
   0x7   :  { %p98_p2 = scmp.lt.s32.totalorder %s96_s15, %s92_s14 }
   0x9   :  { %p99_p3 = por %p98_p2, %p97_p1 }
   0xb   :  { %p100_p4 = pnand %p99_p3, %p93_p0 }
  0x1a   :  { %27 = vperm.xlu0 %85, %v13_v3  }
  0x91   :  { %v17_v4 = vpop.xlane.xlu0 %16 }
  0x92   :  { %v18_v5 = vsub.f32 %v12_v0, %v17_v4 }
  0x94   :  { %v19_v6 = vmul.f32 1.442695, %v18_v5 }
  0x96   :  { %86 = vpow2.f32 %v19_v6 }
  0x99   :  { %v28_v9 = vpop.permute.xlu0 %27 }
  0x9a   :  { %vm29_vm1 = vcmp.eq.s32.totalorder %v25_v8, %v28_v9 }
  0x9b   :  { %v30_v13 = vsel %vm29_vm1, %v12_v0, 0.0 }
  0x9c   :  { %v31_v15 = vsel %vm14_vm0, %v30_v13, 0.0 }
  0xa0   :  { %v87_v10 = vpop.eup %86 }
  0xa1   :  { %v21_v11 = vsel %vm14_vm0, %v87_v10, 0.0  ;;  %v34_v12 = vsel %vm29_vm1, %v87_v10, 0.0 }
  0xa2   :  { %22 = vadd.xlane.f32.xlu1 %v21_v11  ;;  %v35_v14 = vsel %vm14_vm0, %v34_v12, 0.0 }
  0xa6   :  { %36 = vadd.xlane.f32.xlu1 %v35_v14 }
  0xaa   :  { %32 = vadd.xlane.f32.xlu1 %v31_v15 }
 0x12f   :  { %v23_v16 = vpop.xlane.xlu1 %22 }
 0x130   :  { %88 = vrcp.f32 %v23_v16 }
 0x131   :  { %90 = vlog2.f32 %v23_v16 }
 0x133   :  { %v37_v22 = vpop.xlane.xlu1 %36 }
 0x137   :  { %v33_v28 = vpop.xlane.xlu1 %32 }
 0x13a   :  { %v89_v17 = vpop.eup %88 }
 0x13b   :  { %v43_v18 = vmul.f32 %v89_v17, %v23_v16  ;;  %v91_v20 = vpop.eup %90 }
 0x13c   :  { %v39_v24 = vmul.f32 0.6931472, %v91_v20 }
 0x13d   :  { %v44_v19 = vsub.f32 2.0, %v43_v18 }
 0x13e   :  { %v40_v27 = vadd.f32 %v39_v24, %v17_v4 }
 0x13f   :  { %v45_v21 = vmul.f32 %v89_v17, %v44_v19 }
 0x140   :  { %v41_v31 = vsub.f32 %v40_v27, %v33_v28 }
 0x141   :  { %v46_v23 = vmul.f32 %v45_v21, %v37_v22 }
 0x143   :  { %v47_v25 = vsub.f32 1.0, %v46_v23 }
 0x145   :  { %v48_v26 = vmax.f32 %v47_v25, 0.0 }
 0x147   :  { %v49_v29 = vmul.f32 %v48_v26, %v48_v26 }
 0x149   :  { %v50_v30 = vmul.f32 0.25, %v49_v29 }
 0x14b   :  { %v51_v32 = vmul.f32 %v50_v30, %v41_v31 }
 0x14d   :  { %v53_v33 = vsel %vm52_vm2, %v51_v32, 0.0 }
 0x14e   :  { %54 = vadd.xlane.f32.xlu1 %v53_v33 }
 0x1db   :  { %v55_v34 = vpop.xlane.xlu1 %54 }
 0x1dc   :  { %v56_v35 = vrot.slane %v55_v34, 4 }
 0x1de   :  { %v57_v36 = vadd.f32 %v56_v35, %v55_v34 }
 0x1e0   :  { %v58_v37 = vrot.slane %v57_v36, 2 }
 0x1e2   :  { %v59_v38 = vadd.f32 %v58_v37, %v57_v36 }
 0x1e4   :  { %v60_v39 = vrot.slane %v59_v38, 1 }
 0x1e6   :  { %v61_v40 = vadd.f32 %v60_v39, %v59_v38 }
 0x1e8   :  { %81 = vpush %v61_v40 }
 0x219   :  { %s82_s13 = spop %81 }
 0x21a   :  { %v64_v41 = vstv %s82_s13 }
 0x21b   :  { %v65_v42 = vsel %vm63_vm3, %v64_v41, 0.0 }
 0x21c   :  { %66 = vst [vmem:[#allocation2] sm:$0x1] %v65_v42 }
 0x21d   :  { %103 = shalt.err (!%p100_p4)
}
 0x21e   :  { %s104_s18 = scalar_lea.hbm %s157_s2, 16 }
 0x21f   :  { %p105_p5 = scmp.ne.s32.totalorder %s157_s2, %s104_s18  ;;  %p108_p6 = scmp.lt.u32.totalorder %s104_s18, %s157_s2 }
 0x221   :  { %p110_p7 = pnand %p108_p6, %p105_p5 }
 0x223   :  { %113 = shalt.err (!%p110_p7)
}
 0x224   :  { %76 = dma.vmem_to_hbm [thread:$0]  %s74_s1, 16, %s157_s2, [#allocation3]  }
 0x225   :  { %114 = dma.done.wait [#allocation3], 16  }
 0x226   :  { %115 = vsyncadd [#allocation3], 4294967280 }
 0x227   :  { %80 = vsyncpa [#allocation3], 1 }

</bundles_post_ra>
